<compile_context>
chip_gen: v7x
topology: tpu7x:2x2x1
jax: 0.10.0
libtpu: 0.0.40
codegen_flags: <defaults>
</compile_context>

<pallas_src>
import jax
import jax.numpy as jnp
from jax.experimental import pallas as pl
from jax.experimental.pallas import tpu as pltpu


def implicitm_kernel(imp_ref, x_ref, o_ref):
    # imp_ref: (Bs, 1) f32 per-row scale; x_ref / o_ref: (Bs, Bl) activations.
    # Multiply in f32 (matches the f32 nn.Parameter), cast back to the
    # activation dtype for the output.
    o_ref[...] = (x_ref[...].astype(jnp.float32) * imp_ref[...]).astype(o_ref.dtype)


def _cdiv(a, b):
    return -(-a // b)


def _vmem_budget_bytes():
    """Total bytes we allow for all pipelined blocks (in + out, x2 buffers)."""
    try:
        cap = pltpu.get_tpu_info().vmem_capacity_bytes
    except Exception:
        cap = 64 * 1024 * 1024  # conservative: v7x has 64 MiB per TensorCore
    # Use at most ~3/8 of physical VMEM for our blocks, never more than 24 MiB
    # total -> <= 6 MiB per block, plenty to hit the HBM roofline on v5e/v6e/v7x.
    return min(cap * 3 // 8, 24 * 1024 * 1024)


def _choose_tiling(rows, hw, itemsize, vmem_budget_bytes):
    """Pick (row_block, lane_block) for a streaming elementwise op.

    VMEM use ~= (x_block + out_block) * 2 double-buffers = 4 * Bs * Bl * itemsize.
    """
    max_block_bytes = max(vmem_budget_bytes // 4, 8 * 128 * itemsize)

    # Lane block: keep the full HW when even a minimal 8-row slab fits (or when
    # HW is small / not a 128 multiple -> rely on the full-dim exception);
    # otherwise tile lanes in multiples of 128.
    if 8 * hw * itemsize <= max_block_bytes or hw < 128 or hw % 128 != 0:
        bl = hw
    else:
        bl = (max_block_bytes // (8 * itemsize)) // 128 * 128
        bl = max(128, min(bl, hw))

    # Row block: multiple of 8 (sublane dense), or the full row count if small.
    if rows <= 8:
        bs = rows
    else:
        bs = (max_block_bytes // (bl * itemsize)) // 8 * 8
        bs = max(8, min(bs, rows))

    # For large tensors, prefer >= 2 grid steps so the ("parallel", "parallel")
    # grid can be sharded across both v7x TensorCores.  Tiny tensors stay as a
    # single step (extra steps only add ~0.35 us each on single-TC chips).
    total_bytes = rows * hw * itemsize
    if total_bytes >= (4 << 20) and rows >= 16:
        if _cdiv(rows, bs) * _cdiv(hw, bl) < 2:
            bs = max(8, _cdiv(rows, 2) // 8 * 8)

    return bs, bl


def implicitm_pallas(x_nchw, implicit):
    """x_nchw: (N, C, H, W); implicit: (1, C, 1, 1).  Returns (N, C, H, W)."""
    N, C, H, W = x_nchw.shape
    HW = H * W
    R = N * C

    # Free (metadata-only) reshape to a sublane/lane-dense 2-D row slab.
    x = x_nchw.reshape(R, HW)
    # Tiny (R, 1) f32 per-row scale column (per-channel scale repeated per image).
    imp_rows = jnp.broadcast_to(
        implicit.reshape(1, C).astype(jnp.float32), (N, C)).reshape(R, 1)

    itemsize = x.dtype.itemsize
    bs, bl = _choose_tiling(R, HW, itemsize, _vmem_budget_bytes())
    grid = (_cdiv(R, bs), _cdiv(HW, bl))

    # Actual VMEM need: (x + out) blocks double-buffered + the tiny scale column.
    vmem_need = 2 * (2 * bs * bl * itemsize + bs * 4)
    vmem_limit = int(min(max(2 * vmem_need, 32 << 20), 64 << 20))

    out = pl.pallas_call(
        implicitm_kernel,
        out_shape=jax.ShapeDtypeStruct((R, HW), x.dtype),
        grid=grid,
        in_specs=[
            pl.BlockSpec((bs, 1), lambda i, j: (i, 0)),    # per-row scale
            pl.BlockSpec((bs, bl), lambda i, j: (i, j)),   # activations
        ],
        out_specs=pl.BlockSpec((bs, bl), lambda i, j: (i, j)),
        compiler_params=pltpu.CompilerParams(
            dimension_semantics=("parallel", "parallel"),
            vmem_limit_bytes=vmem_limit),
    )(imp_rows, x)

    return out.reshape(N, C, H, W)


# ---------------- pure-JAX reference for verification ----------------
def implicitm_ref(x_nchw, implicit):
    return implicit * x_nchw


if __name__ == "__main__":
    # Module config: ImplicitM(channel=4), input (N=2, C=4, H=16, W=16)
    N, C, H, W = 2, 4, 16, 16

    key = jax.random.PRNGKey(0)
    k_imp, k_x = jax.random.split(key, 2)

    # implicit ~ N(mean=1.0, std=0.02), shape (1, C, 1, 1) like the nn.Parameter
    implicit = 1.0 + 0.02 * jax.random.normal(k_imp, (1, C, 1, 1), jnp.float32)
    x = jax.random.normal(k_x, (N, C, H, W), jnp.float32)

    out = implicitm_pallas(x, implicit)
    out = jax.block_until_ready(out)

    ref = implicitm_ref(x, implicit)
    assert out.shape == (N, C, H, W)
    assert jnp.allclose(out, ref, atol=1e-6, rtol=1e-6), \
        f"max abs err {jnp.max(jnp.abs(out - ref))}"

    print("KERNEL_OK")
</pallas_src>

<mosaic_0001>
module attributes {stable_mosaic.version = 11 : i64} {
  func.func @implicitm_kernel(%arg0: i32, %arg1: i32, %arg2: memref<8x1xf32, #tpu.memory_space<vmem>>, %arg3: memref<8x256xf32, #tpu.memory_space<vmem>>, %arg4: memref<8x256xf32, #tpu.memory_space<vmem>>) attributes {dimension_semantics = [#tpu.dimension_semantics<parallel>, #tpu.dimension_semantics<parallel>], iteration_bounds = array<i64: 1, 1>, scalar_prefetch = 0 : i64, scratch_operands = 0 : i64, tpu.core_type = #tpu.core_type<tc>, window_params = [{transform_indices = @transform_0, window_bounds = array<i64: 8, 1>}, {transform_indices = @transform_1, window_bounds = array<i64: 8, 256>}, {transform_indices = @transform_2, window_bounds = array<i64: 8, 256>}]} {
    %c0 = arith.constant 0 : index
    %c0_0 = arith.constant 0 : index
    %0 = vector.load %arg3[%c0, %c0_0] : memref<8x256xf32, #tpu.memory_space<vmem>>, vector<8x256xf32>
    %c0_1 = arith.constant 0 : index
    %c0_2 = arith.constant 0 : index
    %1 = vector.load %arg2[%c0_1, %c0_2] : memref<8x1xf32, #tpu.memory_space<vmem>>, vector<8x1xf32>
    %2 = vector.broadcast %1 : vector<8x1xf32> to vector<8x256xf32>
    %3 = arith.mulf %0, %2 : vector<8x256xf32>
    %c0_3 = arith.constant 0 : index
    %c0_4 = arith.constant 0 : index
    %4 = vector.load %arg4[%c0_3, %c0_4] : memref<8x256xf32, #tpu.memory_space<vmem>>, vector<8x256xf32>
    tpu.vector_store %arg4[%c0_3, %c0_4], %3 {strides = array<i32>} : memref<8x256xf32, #tpu.memory_space<vmem>>, vector<8x256xf32>,
    return
  }
  func.func @transform_0(%arg0: i32, %arg1: i32) -> (i32, i32) {
    %c0_i32 = arith.constant 0 : i32
    %c0_i32_0 = arith.constant 0 : i32
    return %arg0, %c0_i32 : i32, i32
  }
  func.func @transform_1(%arg0: i32, %arg1: i32) -> (i32, i32) {
    %c0_i32 = arith.constant 0 : i32
    return %arg0, %arg1 : i32, i32
  }
  func.func @transform_2(%arg0: i32, %arg1: i32) -> (i32, i32) {
    %c0_i32 = arith.constant 0 : i32
    return %arg0, %arg1 : i32, i32
  }
}

</mosaic_0001>

<bundles_post_ra>
// kernel: tpu_custom_call.1
= control target key start
LH: loop header
LB: loop body
LE: loop exit
PB: predicated region body
PF: predicated region fallthrough
CT: control target
= control target key end

     0   :  { %7 = vsyncpa [#allocation3], 0  ;;  %s148_s0 = inlined_call_operand.vmem [shape: f32[8,1], index: 0, kind: input, shape index: {}]   ;;  %s149_s1 = inlined_call_operand.hbm [shape: f32[8,256], index: 1, kind: input, shape index: {}]   ;;  %s150_s2 = inlined_call_operand.hbm [shape: f32[8,256], index: 2, kind: output, shape index: {}]  }
   0x1   :  { %8 = vsyncpa [#allocation4], 0  ;;  %s103_s9 = smov [#allocation2]   ;;  %s55_s13 = scalar_lea.hbm %s149_s1, 256 }
   0x2   :  { %s17_s10 = sshll.u32 %s103_s9, 4  ;;  %p56_p0 = scmp.ne.s32.totalorder %s149_s1, %s55_s13  ;;  %s18_s10 = int_to_ptr.vmem [resolvable:$true] %s17_s10 }
   0x3   :  { %p59_p1 = scmp.lt.u32.totalorder %s55_s13, %s149_s1 }
   0x5   :  { %p61_p2 = pnand %p59_p1, %p56_p0 }
   0x7   :  { %64 = shalt.err (!%p61_p2)
}
   0x8   :  { %s65_s18 = scalar_lea.vmem %s18_s10, 256  ;;  %p70_p4 = scmp.lt.s32.totalorder %s18_s10, %s18_s10 }
   0x9   :  { %p66_p3 = scmp.ne.s32.totalorder %s18_s10, %s65_s18  ;;  %p71_p5 = scmp.lt.s32.totalorder %s65_s18, %s65_s18 }
   0xb   :  { %p72_p6 = por %p71_p5, %p70_p4 }
   0xd   :  { %p73_p7 = pnand %p72_p6, %p66_p3 }
   0xf   :  { %76 = shalt.err (!%p73_p7)
}
  0x10   :  { %20 = dma.hbm_to_vmem [thread:$0]  %s149_s1, 256, %s18_s10, [#allocation3]  }
  0x11   :  { %99 = dma.done.wait [#allocation3], 256  }
  0x12   :  { %100 = vsyncadd [#allocation3], 4294967040  ;;  %v104_v0 = vmov 0   ;;  %v26_v1 = vld [vmem:[%s148_s0] sm:$0xff]  ;;  %v25_v3 = vld [vmem:[#allocation2 + $0x8] sm:$0xff]  ;;  %s105_s23 = smov [#allocation5]  }
  0x13   :  { %54 = vset.pattern.permute.xlu0 %v104_v0  ;;  %v24_v2 = vld [vmem:[#allocation2] sm:$0xff]  ;;  %s42_s24 = sshll.u32 %s105_s23, 4  ;;  %s43_s24 = int_to_ptr.vmem [resolvable:$true] %s42_s24 }
  0x14   :  { %29 = vperm.xlu0 %54, %v26_v1   ;;  %s77_s1 = scalar_lea.vmem %s43_s24, 256  ;;  %p82_p9 = scmp.lt.s32.totalorder %s43_s24, %s43_s24 }
  0x15   :  { %p78_p8 = scmp.ne.s32.totalorder %s43_s24, %s77_s1  ;;  %p83_p10 = scmp.lt.s32.totalorder %s77_s1, %s77_s1 }
  0x17   :  { %p84_p11 = por %p83_p10, %p82_p9 }
  0x19   :  { %p85_p12 = pnand %p84_p11, %p78_p8 }
  0x93   :  { %v30_v4 = vpop.permute.xlu0 %29 }
  0x94   :  { %v32_v5 = vmul.f32 %v30_v4, %v24_v2  ;;  %v33_v6 = vmul.f32 %v30_v4, %v25_v3 }
  0x96   :  { %34 = vst [vmem:[#allocation5] sm:$0xff] %v32_v5  ;;  %35 = vst [vmem:[#allocation5 + $0x8] sm:$0xff] %v33_v6 }
  0x97   :  { %88 = shalt.err (!%p85_p12)
}
  0x98   :  { %s89_s26 = scalar_lea.hbm %s150_s2, 256 }
  0x99   :  { %p90_p13 = scmp.ne.s32.totalorder %s150_s2, %s89_s26  ;;  %p93_p0 = scmp.lt.u32.totalorder %s89_s26, %s150_s2 }
  0x9b   :  { %p95_p1 = pnand %p93_p0, %p90_p13 }
  0x9d   :  { %98 = shalt.err (!%p95_p1)
}
  0x9e   :  { %45 = dma.vmem_to_hbm [thread:$0]  %s43_s24, 256, %s150_s2, [#allocation4]  }
  0x9f   :  { %101 = dma.done.wait [#allocation4], 256  }
  0xa0   :  { %102 = vsyncadd [#allocation4], 4294967040 }
  0xa1   :  { %49 = vsyncpa [#allocation3], 1 }
  0xa2   :  { %50 = vsyncpa [#allocation4], 1 }

</bundles_post_ra>
